<compile_context>
chip_gen: v5e
topology: v5e:2x2
jax: 0.10.0
libtpu: 0.0.40
codegen_flags: <defaults>
</compile_context>

<pallas_src>
import functools

import jax
import jax.numpy as jnp
from jax import lax
from jax.experimental import pallas as pl
from jax.experimental.pallas import tpu as pltpu


def _round_up(x, m):
    return (x + m - 1) // m * m


def _dwsep_kernel(x_ref, wdw_ref, b1_ref, wpw_ref, b2_ref, o_ref, *,
                  stride, wp, n_lanes, c_in, mxu_bf16):
    """Fused depthwise 3x3 + BN shift + ReLU + pointwise 1x1 + BN shift + ReLU.

    x_ref   : (Cin, Lblk)     lane-dense, batch-folded, zero-padded images
                              (per-image segments of Li = stride*Lo lanes,
                              plus a trailing halo per chunk)
    wdw_ref : (Cin, 9)        depthwise weights, BN1 scale pre-folded
    b1_ref  : (Cin, 1)        BN1 shift
    wpw_ref : (Cout, Cin)     pointwise weights (transposed), BN2 scale folded
    b2_ref  : (Cout, 1)       BN2 shift
    o_ref   : (Cout, n_lanes) lane-dense output (per-image segments of Lo)
    """
    x = x_ref[...]                                   # (Cin, Lblk) f32
    wdw = wdw_ref[...]                               # (Cin, 9)

    def wcol(t):                                     # (Cin, 1) weight column
        return lax.slice(wdw, (0, t), (c_in, t + 1))

    if stride == 1:
        # Row-sums-then-row-shifts: 3 shared dw-shifted windows, 9 MACs over
        # the window, then 2 row (dh*wp) shifts -> 4 non-zero-offset slices.
        win = n_lanes + 2 * wp
        s = [lax.slice(x, (0, dw), (c_in, dw + win)) for dw in range(3)]
        acc = None
        for dh in range(3):
            p = (s[0] * wcol(3 * dh) + s[1] * wcol(3 * dh + 1)
                 + s[2] * wcol(3 * dh + 2))
            term = lax.slice(p, (0, dh * wp), (c_in, dh * wp + n_lanes))
            acc = term if acc is None else acc + term
    else:
        # TODO(synk): strided lane slices lower to gathers/selects; at real
        # stride-2 sizes deinterleave the W phases in the wrapper instead.
        acc = jnp.zeros((c_in, n_lanes), jnp.float32)
        for dh in range(3):
            for dw in range(3):
                off = dh * wp + dw
                tap = lax.slice(x, (0, off),
                                (c_in, off + stride * (n_lanes - 1) + 1),
                                (1, stride))
                acc = acc + tap * wcol(3 * dh + dw)

    # ---- BN1 shift (scale folded into wdw) + ReLU ----
    y = jnp.maximum(acc + b1_ref[...], 0.0)          # (Cin, n_lanes)

    # ---- pointwise 1x1 conv: one wide lane-dense MXU matmul ----
    w_pw = wpw_ref[...]
    if mxu_bf16:
        z = jnp.dot(w_pw.astype(jnp.bfloat16), y.astype(jnp.bfloat16),
                    preferred_element_type=jnp.float32)
    else:
        z = jnp.dot(w_pw, y, preferred_element_type=jnp.float32)

    # ---- BN2 shift + ReLU ----
    z = jnp.maximum(z + b2_ref[...], 0.0)
    o_ref[...] = z.astype(o_ref.dtype)


def dwsep_conv(x_nchw, wdw, s1, b1, wpw, s2, b2, *, stride=1, padding=1,
               num_chunks=1, mxu_bf16=False):
    """x_nchw: (N, Cin, H, W) float32. Returns (N, Cout, Hout, Wout).

    num_chunks: "parallel" grid axis over groups of images (set 2 on v7x so
    both TensorCores get work; leave 1 on v5e/v6e for one wide step).
    """
    n, c_in, h, w = x_nchw.shape
    c_out = wpw.shape[1]
    kh = kw = 3
    h_out = (h + 2 * padding - kh) // stride + 1
    w_out = (w + 2 * padding - kw) // stride + 1
    hp, wp = h + 2 * padding, w + 2 * padding

    if n % num_chunks != 0:
        num_chunks = 1
    g = n // num_chunks

    # Per-image lane segments.  Lo (output) is 128-aligned; Li = stride*Lo so a
    # single (strided) slice of the concatenated input addresses every image.
    l_out = h_out * wp                                    # valid + garbage cols
    lx_needed = stride * (l_out - 1) + (kh - 1) * wp + (kw - 1) + 1
    lo = _round_up(max(l_out, pl.cdiv(max(lx_needed, hp * wp), stride)), 128)
    li = stride * lo
    halo = _round_up(2 * wp + 3, 128)                     # per-chunk tap halo
    l_chunk_in = g * li + halo
    l_chunk_out = g * lo

    # ---- fold inference-mode BN scales into the conv weights ----
    wdw_f = (wdw * s1[None, None, :]).astype(jnp.float32)          # (3,3,Cin)
    wpw_f = (wpw * s2[None, :]).astype(jnp.float32)                # (Cin,Cout)
    wdw_k = jnp.transpose(wdw_f.reshape(kh * kw, c_in), (1, 0))    # (Cin,9)
    wpw_k = jnp.transpose(wpw_f, (1, 0))                           # (Cout,Cin)
    b1_k = b1.reshape(c_in, 1).astype(jnp.float32)
    b2_k = b2.reshape(c_out, 1).astype(jnp.float32)

    # ---- zero-pad spatially, flatten H*W, fold batch into the lane axis ----
    xp = jnp.pad(x_nchw.astype(jnp.float32),
                 ((0, 0), (0, 0), (padding, padding), (padding, padding)))
    x_seg = jnp.pad(xp.reshape(n, c_in, hp * wp),
                    ((0, 0), (0, 0), (0, li - hp * wp)))           # (N,Cin,Li)
    x_cat = jnp.transpose(x_seg, (1, 0, 2)).reshape(c_in, num_chunks, g * li)
    x_cat = jnp.pad(x_cat, ((0, 0), (0, 0), (0, halo)))
    x_cat = x_cat.reshape(c_in, num_chunks * l_chunk_in)

    kernel = functools.partial(_dwsep_kernel, stride=stride, wp=wp,
                               n_lanes=l_chunk_out, c_in=c_in,
                               mxu_bf16=mxu_bf16)

    out_cat = pl.pallas_call(
        kernel,
        out_shape=jax.ShapeDtypeStruct((c_out, num_chunks * l_chunk_out),
                                       jnp.float32),
        grid_spec=pltpu.PrefetchScalarGridSpec(
            num_scalar_prefetch=0,
            grid=(num_chunks,),
            in_specs=[
                pl.BlockSpec((c_in, l_chunk_in), lambda i: (0, i)),
                pl.BlockSpec((c_in, kh * kw), lambda i: (0, 0)),
                pl.BlockSpec((c_in, 1), lambda i: (0, 0)),
                pl.BlockSpec((c_out, c_in), lambda i: (0, 0)),
                pl.BlockSpec((c_out, 1), lambda i: (0, 0)),
            ],
            out_specs=pl.BlockSpec((c_out, l_chunk_out), lambda i: (0, i)),
        ),
        compiler_params=pltpu.CompilerParams(
            dimension_semantics=("parallel",)),
    )(x_cat, wdw_k, b1_k, wpw_k, b2_k)

    # Un-fold batch, crop garbage columns (w >= Wout) -> NCHW.
    # TODO(synk): at real sizes fuse this crop into the consumer (or keep the
    # padded (Hout, Wp) layout) to avoid an extra XLA pass over the output.
    out = out_cat.reshape(c_out, n, lo).transpose(1, 0, 2)[:, :, :l_out]
    out = out.reshape(n, c_out, h_out, wp)[:, :, :, :w_out]
    return out


def _reference(x_nchw, wdw, s1, b1, wpw, s2, b2, *, stride=1, padding=1):
    """Pure-JAX reference (NCHW conv), for correctness checking."""
    c_in = x_nchw.shape[1]
    w_dw = jnp.transpose(wdw, (2, 0, 1))[:, None, :, :]   # (Cin,1,3,3)
    y = lax.conv_general_dilated(
        x_nchw, w_dw, window_strides=(stride, stride),
        padding=((padding, padding), (padding, padding)),
        feature_group_count=c_in,
        dimension_numbers=("NCHW", "OIHW", "NCHW"))
    y = y * s1[None, :, None, None] + b1[None, :, None, None]
    y = jnp.maximum(y, 0.0)
    w_pw = jnp.transpose(wpw, (1, 0))[:, :, None, None]   # (Cout,Cin,1,1)
    z = lax.conv_general_dilated(
        y, w_pw, window_strides=(1, 1), padding="VALID",
        dimension_numbers=("NCHW", "OIHW", "NCHW"))
    z = z * s2[None, :, None, None] + b2[None, :, None, None]
    return jnp.maximum(z, 0.0)


if __name__ == "__main__":
    # Shapes consistent with DWSepConv(in_c=8, out_c=16, stride=1, padding=1)
    N, C_IN, C_OUT, H, W = 2, 8, 16, 16, 16
    STRIDE, PADDING = 1, 1
    EPS = 1e-5

    key = jax.random.PRNGKey(0)
    k = jax.random.split(key, 8)

    x = jax.random.normal(k[0], (N, C_IN, H, W), dtype=jnp.float32)

    w_dw = jax.random.normal(k[1], (3, 3, C_IN), dtype=jnp.float32) * 0.2   # depthwise (kh,kw,Cin)
    w_pw = jax.random.normal(k[2], (C_IN, C_OUT), dtype=jnp.float32) * 0.2  # pointwise (Cin,Cout)

    gamma1 = 1.0 + 0.1 * jax.random.normal(k[3], (C_IN,), dtype=jnp.float32)
    beta1 = 0.1 * jax.random.normal(k[4], (C_IN,), dtype=jnp.float32)
    mean1 = jnp.zeros((C_IN,), jnp.float32)
    var1 = jnp.ones((C_IN,), jnp.float32)

    gamma2 = 1.0 + 0.1 * jax.random.normal(k[5], (C_OUT,), dtype=jnp.float32)
    beta2 = 0.1 * jax.random.normal(k[6], (C_OUT,), dtype=jnp.float32)
    mean2 = jnp.zeros((C_OUT,), jnp.float32)
    var2 = jnp.ones((C_OUT,), jnp.float32)

    # Fold BN (inference mode) into per-channel scale/shift.
    s1 = gamma1 / jnp.sqrt(var1 + EPS)
    b1 = beta1 - mean1 * s1
    s2 = gamma2 / jnp.sqrt(var2 + EPS)
    b2 = beta2 - mean2 * s2

    ref = _reference(x, w_dw, s1, b1, w_pw, s2, b2,
                     stride=STRIDE, padding=PADDING)

    # 1) Default path: whole batch in one wide grid step, f32 pointwise.
    out = jax.block_until_ready(
        dwsep_conv(x, w_dw, s1, b1, w_pw, s2, b2,
                   stride=STRIDE, padding=PADDING))
    assert out.shape == (N, C_OUT, H, W), out.shape
    assert jnp.allclose(out, ref, atol=1e-4, rtol=1e-4), "f32 path mismatch"

    # 2) Two-chunk "parallel" grid (keeps both v7x TensorCores busy).
    out2 = jax.block_until_ready(
        dwsep_conv(x, w_dw, s1, b1, w_pw, s2, b2,
                   stride=STRIDE, padding=PADDING, num_chunks=2))
    assert jnp.allclose(out2, ref, atol=1e-4, rtol=1e-4), "chunked path mismatch"

    # 3) bf16 MXU pointwise (the fast MXU path at real MobileNet Cin);
    #    looser tolerance because inputs to the dot are rounded to bf16.
    out3 = jax.block_until_ready(
        dwsep_conv(x, w_dw, s1, b1, w_pw, s2, b2,
                   stride=STRIDE, padding=PADDING, mxu_bf16=True))
    assert jnp.allclose(out3, ref, atol=5e-2, rtol=5e-2), "bf16 path mismatch"

    print("KERNEL_OK")
</pallas_src>

<mosaic_0001>
module attributes {stable_mosaic.version = 11 : i64} {
  func.func @_dwsep_kernel(%arg0: i32, %arg1: memref<8x896xf32, #tpu.memory_space<vmem>>, %arg2: memref<8x9xf32, #tpu.memory_space<vmem>>, %arg3: memref<8x1xf32, #tpu.memory_space<vmem>>, %arg4: memref<16x8xf32, #tpu.memory_space<vmem>>, %arg5: memref<16x1xf32, #tpu.memory_space<vmem>>, %arg6: memref<16x768xf32, #tpu.memory_space<vmem>>) attributes {dimension_semantics = [#tpu.dimension_semantics<parallel>], iteration_bounds = array<i64: 1>, scalar_prefetch = 0 : i64, scratch_operands = 0 : i64, tpu.core_type = #tpu.core_type<tc>, window_params = [{transform_indices = @transform_0, window_bounds = array<i64: 8, 896>}, {pipeline_mode = #tpu.pipeline_mode<synchronous>, transform_indices = @transform_1, window_bounds = array<i64: 8, 9>}, {pipeline_mode = #tpu.pipeline_mode<synchronous>, transform_indices = @transform_2, window_bounds = array<i64: 8, 1>}, {pipeline_mode = #tpu.pipeline_mode<synchronous>, transform_indices = @transform_3, window_bounds = array<i64: 16, 8>}, {pipeline_mode = #tpu.pipeline_mode<synchronous>, transform_indices = @transform_4, window_bounds = array<i64: 16, 1>}, {transform_indices = @transform_5, window_bounds = array<i64: 16, 768>}]} {
    %c0 = arith.constant 0 : index
    %c0_0 = arith.constant 0 : index
    %0 = vector.load %arg1[%c0, %c0_0] : memref<8x896xf32, #tpu.memory_space<vmem>>, vector<8x896xf32>
    %c0_1 = arith.constant 0 : index
    %c0_2 = arith.constant 0 : index
    %1 = vector.load %arg2[%c0_1, %c0_2] : memref<8x9xf32, #tpu.memory_space<vmem>>, vector<8x9xf32>
    %2 = vector.extract_strided_slice %0 {offsets = [0, 0], sizes = [8, 804], strides = [1, 1]} : vector<8x896xf32> to vector<8x804xf32>
    %3 = vector.extract_strided_slice %0 {offsets = [0, 1], sizes = [8, 804], strides = [1, 1]} : vector<8x896xf32> to vector<8x804xf32>
    %4 = vector.extract_strided_slice %0 {offsets = [0, 2], sizes = [8, 804], strides = [1, 1]} : vector<8x896xf32> to vector<8x804xf32>
    %5 = vector.extract_strided_slice %1 {offsets = [0, 0], sizes = [8, 1], strides = [1, 1]} : vector<8x9xf32> to vector<8x1xf32>
    %6 = vector.broadcast %5 : vector<8x1xf32> to vector<8x804xf32>
    %7 = arith.mulf %2, %6 : vector<8x804xf32>
    %8 = vector.extract_strided_slice %1 {offsets = [0, 1], sizes = [8, 1], strides = [1, 1]} : vector<8x9xf32> to vector<8x1xf32>
    %9 = vector.broadcast %8 : vector<8x1xf32> to vector<8x804xf32>
    %10 = arith.mulf %3, %9 : vector<8x804xf32>
    %11 = arith.addf %7, %10 : vector<8x804xf32>
    %12 = vector.extract_strided_slice %1 {offsets = [0, 2], sizes = [8, 1], strides = [1, 1]} : vector<8x9xf32> to vector<8x1xf32>
    %13 = vector.broadcast %12 : vector<8x1xf32> to vector<8x804xf32>
    %14 = arith.mulf %4, %13 : vector<8x804xf32>
    %15 = arith.addf %11, %14 : vector<8x804xf32>
    %16 = vector.extract_strided_slice %15 {offsets = [0, 0], sizes = [8, 768], strides = [1, 1]} : vector<8x804xf32> to vector<8x768xf32>
    %17 = vector.extract_strided_slice %1 {offsets = [0, 3], sizes = [8, 1], strides = [1, 1]} : vector<8x9xf32> to vector<8x1xf32>
    %18 = vector.broadcast %17 : vector<8x1xf32> to vector<8x804xf32>
    %19 = arith.mulf %2, %18 : vector<8x804xf32>
    %20 = vector.extract_strided_slice %1 {offsets = [0, 4], sizes = [8, 1], strides = [1, 1]} : vector<8x9xf32> to vector<8x1xf32>
    %21 = vector.broadcast %20 : vector<8x1xf32> to vector<8x804xf32>
    %22 = arith.mulf %3, %21 : vector<8x804xf32>
    %23 = arith.addf %19, %22 : vector<8x804xf32>
    %24 = vector.extract_strided_slice %1 {offsets = [0, 5], sizes = [8, 1], strides = [1, 1]} : vector<8x9xf32> to vector<8x1xf32>
    %25 = vector.broadcast %24 : vector<8x1xf32> to vector<8x804xf32>
    %26 = arith.mulf %4, %25 : vector<8x804xf32>
    %27 = arith.addf %23, %26 : vector<8x804xf32>
    %28 = vector.extract_strided_slice %27 {offsets = [0, 18], sizes = [8, 768], strides = [1, 1]} : vector<8x804xf32> to vector<8x768xf32>
    %29 = arith.addf %16, %28 : vector<8x768xf32>
    %30 = vector.extract_strided_slice %1 {offsets = [0, 6], sizes = [8, 1], strides = [1, 1]} : vector<8x9xf32> to vector<8x1xf32>
    %31 = vector.broadcast %30 : vector<8x1xf32> to vector<8x804xf32>
    %32 = arith.mulf %2, %31 : vector<8x804xf32>
    %33 = vector.extract_strided_slice %1 {offsets = [0, 7], sizes = [8, 1], strides = [1, 1]} : vector<8x9xf32> to vector<8x1xf32>
    %34 = vector.broadcast %33 : vector<8x1xf32> to vector<8x804xf32>
    %35 = arith.mulf %3, %34 : vector<8x804xf32>
    %36 = arith.addf %32, %35 : vector<8x804xf32>
    %37 = vector.extract_strided_slice %1 {offsets = [0, 8], sizes = [8, 1], strides = [1, 1]} : vector<8x9xf32> to vector<8x1xf32>
    %38 = vector.broadcast %37 : vector<8x1xf32> to vector<8x804xf32>
    %39 = arith.mulf %4, %38 : vector<8x804xf32>
    %40 = arith.addf %36, %39 : vector<8x804xf32>
    %41 = vector.extract_strided_slice %40 {offsets = [0, 36], sizes = [8, 768], strides = [1, 1]} : vector<8x804xf32> to vector<8x768xf32>
    %42 = arith.addf %29, %41 : vector<8x768xf32>
    %c0_3 = arith.constant 0 : index
    %c0_4 = arith.constant 0 : index
    %43 = vector.load %arg3[%c0_3, %c0_4] : memref<8x1xf32, #tpu.memory_space<vmem>>, vector<8x1xf32>
    %44 = vector.broadcast %43 : vector<8x1xf32> to vector<8x768xf32>
    %45 = arith.addf %42, %44 : vector<8x768xf32>
    %cst = arith.constant 0.000000e+00 : f32
    %46 = vector.broadcast %cst : f32 to vector<8x768xf32>
    %47 = arith.maximumf %45, %46 : vector<8x768xf32>
    %c0_5 = arith.constant 0 : index
    %c0_6 = arith.constant 0 : index
    %48 = vector.load %arg4[%c0_5, %c0_6] : memref<16x8xf32, #tpu.memory_space<vmem>>, vector<16x8xf32>
    %cst_7 = arith.constant dense<0.000000e+00> : vector<16x768xf32>
    %49 = tpu.matmul %48, %47, %cst_7 {dimension_numbers = #tpu.dot_dimension_numbers<[1], [0], [0], [1], [0, 0, 1, 1], [], []>} : vector<16x8xf32>, vector<8x768xf32>, vector<16x768xf32> -> vector<16x768xf32>
    %c0_8 = arith.constant 0 : index
    %c0_9 = arith.constant 0 : index
    %50 = vector.load %arg5[%c0_8, %c0_9] : memref<16x1xf32, #tpu.memory_space<vmem>>, vector<16x1xf32>
    %51 = vector.broadcast %50 : vector<16x1xf32> to vector<16x768xf32>
    %52 = arith.addf %49, %51 : vector<16x768xf32>
    %cst_10 = arith.constant 0.000000e+00 : f32
    %53 = vector.broadcast %cst_10 : f32 to vector<16x768xf32>
    %54 = arith.maximumf %52, %53 : vector<16x768xf32>
    %c0_11 = arith.constant 0 : index
    %c0_12 = arith.constant 0 : index
    %55 = vector.load %arg6[%c0_11, %c0_12] : memref<16x768xf32, #tpu.memory_space<vmem>>, vector<16x768xf32>
    tpu.vector_store %arg6[%c0_11, %c0_12], %54 {strides = array<i32>} : memref<16x768xf32, #tpu.memory_space<vmem>>, vector<16x768xf32>,
    return
  }
  func.func @transform_0(%arg0: i32) -> (i32, i32) {
    %c0_i32 = arith.constant 0 : i32
    %c0_i32_0 = arith.constant 0 : i32
    return %c0_i32, %arg0 : i32, i32
  }
  func.func @transform_1(%arg0: i32) -> (i32, i32) {
    %c0_i32 = arith.constant 0 : i32
    %c0_i32_0 = arith.constant 0 : i32
    %c0_i32_1 = arith.constant 0 : i32
    return %c0_i32, %c0_i32_0 : i32, i32
  }
  func.func @transform_2(%arg0: i32) -> (i32, i32) {
    %c0_i32 = arith.constant 0 : i32
    %c0_i32_0 = arith.constant 0 : i32
    %c0_i32_1 = arith.constant 0 : i32
    return %c0_i32, %c0_i32_0 : i32, i32
  }
  func.func @transform_3(%arg0: i32) -> (i32, i32) {
    %c0_i32 = arith.constant 0 : i32
    %c0_i32_0 = arith.constant 0 : i32
    %c0_i32_1 = arith.constant 0 : i32
    return %c0_i32, %c0_i32_0 : i32, i32
  }
  func.func @transform_4(%arg0: i32) -> (i32, i32) {
    %c0_i32 = arith.constant 0 : i32
    %c0_i32_0 = arith.constant 0 : i32
    %c0_i32_1 = arith.constant 0 : i32
    return %c0_i32, %c0_i32_0 : i32, i32
  }
  func.func @transform_5(%arg0: i32) -> (i32, i32) {
    %c0_i32 = arith.constant 0 : i32
    %c0_i32_0 = arith.constant 0 : i32
    return %c0_i32, %arg0 : i32, i32
  }
}

</mosaic_0001>

<bundles_post_ra>
// kernel: tpu_custom_call.1
= control target key start
LH: loop header
LB: loop body
LE: loop exit
PB: predicated region body
PF: predicated region fallthrough
CT: control target
= control target key end

     0   :  { %10 = vsyncpa [#allocation3], 0  ;;  %s1139_s0 = inlined_call_operand.hbm [shape: f32[8,896], index: 0, kind: input, shape index: {}]   ;;  %s1140_s1 = inlined_call_operand.vmem [shape: f32[8,9], index: 1, kind: input, shape index: {}]   ;;  %s1141_s2 = inlined_call_operand.vmem [shape: f32[8,1], index: 2, kind: input, shape index: {}]   ;;  %s1142_s3 = inlined_call_operand.vmem [shape: f32[16,8], index: 3, kind: input, shape index: {}]   ;;  %s1143_s4 = inlined_call_operand.vmem [shape: f32[16,1], index: 4, kind: input, shape index: {}]   ;;  %s1144_s5 = inlined_call_operand.hbm [shape: f32[16,768], index: 5, kind: output, shape index: {}]  }
   0x1   :  { %11 = vsyncpa [#allocation4], 0  ;;  %s17_s20 = sshll.u32 %s1139_s0, 4  ;;  %s779_s21 = smov [#allocation2]   ;;  %s18_s20 = int_to_ptr.hbm [resolvable:$true] %s17_s20 }
   0x2   :  { %s19_s22 = sshll.u32 %s779_s21, 4  ;;  %s20_s22 = int_to_ptr.vmem [resolvable:$true] %s19_s22 }
   0x3   :  { %22 = dma.hbm_to_vmem [thread:$0]  %s18_s20, 896, %s20_s22, [#allocation3]  }
   0x4   :  { %775 = dma.done.wait [#allocation3], 896  }
   0x5   :  { %776 = vsyncadd [#allocation3], 4294966400  ;;  %v780_v0 = vmov 4   ;;  %v781_v1 = vmov 7   ;;  %v782_v2 = vmov 1   ;;  %v42_v3 = vld [vmem:[%s1140_s1] sm:$0xff] }
   0x6   :  { %717 = vset.pattern.permute.xlu0 %v780_v0  ;;  %719 = vset.pattern.permute.xlu1 %v781_v1  ;;  %v783_v4 = vmov 5   ;;  %v784_v5 = vmov 8   ;;  %v785_v6 = vmov 3   ;;  %v786_v7 = vmov 6   ;;  %v466_v10 = vld [vmem:[%s1141_s2] sm:$0xff]  ;;  %v835_v11 = vld [vmem:[#allocation2 + $0x10] sm:$0xff] }
   0x7   :  { %721 = vset.pattern.permute.xlu2 %v782_v2  ;;  %168 = vperm.xlu0 %717, %v42_v3   ;;  %v787_v8 = vmov 2   ;;  %v788_v9 = vmov 0   ;;  %v837_v12 = vld [vmem:[#allocation2 + $0x8] sm:$0xff]  ;;  %v839_v13 = vld [vmem:[#allocation2] sm:$0xff]  ;;  %s789_s25 = smov 127   ;;  %v853_v20 = vld [vmem:[#allocation2 + $0x18] sm:$0xff] }
   0x8   :  { %323 = vperm.xlu1 %719, %v42_v3   ;;  %55 = vperm.xlu2 %721, %v42_v3   ;;  %s790_s2 = smov 126   ;;  %v873_v31 = vld [vmem:[#allocation2 + $0x28] sm:$0xff]  ;;  %v882_v35 = vld [vmem:[#allocation2 + $0x20] sm:$0xff]  ;;  %v897_v43 = vld [vmem:[#allocation2 + $0x30] sm:$0xff]  ;;  %vm86_vm0 = vcmask 1039360   ;;  %vm137_vm1 = vcmask 1031168  }
   0x9   :  { %s791_s26 = smov 110   ;;  %s792_s27 = smov 92   ;;  %vm292_vm2 = vcmask 900096   ;;  %vm447_vm3 = vcmask 752640   ;;  %vm498_vm4 = vcmask 64512  }
   0xa   :  { %s673_s13 = sshll.u32 %s1144_s5, 4  ;;  %s794_s14 = smov 768   ;;  %s674_s13 = int_to_ptr.hbm [resolvable:$true] %s673_s13 }
   0xb   :  { %s795_s15 = smov 48  }
   0xf   :  { %718 = vset.pattern.permute.xlu0 %v783_v4 }
  0x10   :  { %720 = vset.pattern.permute.xlu1 %v784_v5  ;;  %220 = vperm.xlu0 %718, %v42_v3  }
  0x11   :  { %375 = vperm.xlu1 %720, %v42_v3   ;;  %722 = vset.pattern.permute.xlu2 %v785_v6 }
  0x12   :  { %157 = vperm.xlu2 %722, %v42_v3  }
  0x18   :  { %724 = vset.pattern.permute.xlu0 %v786_v7 }
  0x19   :  { %312 = vperm.xlu0 %724, %v42_v3  }
  0x1a   :  { %723 = vset.pattern.permute.xlu2 %v787_v8 }
  0x1b   :  { %106 = vperm.xlu2 %723, %v42_v3  }
  0x21   :  { %726 = vset.pattern.permute.xlu0 %v788_v9 }
  0x23   :  { %725 = vset.pattern.permute.xlu2 %v788_v9 }
  0x24   :  { %45 = vperm.xlu2 %725, %v42_v3  }
  0x2c   :  { %469 = vperm.xlu2 %725, %v466_v10  }
  0x62   :  { %v56_v42 = vpop.permute.xlu2 %55 }
  0x63   :  { %v58_v48 = vmul.f32 %v56_v42, %v839_v13  ;;  %v60_v53 = vmul.f32 %v56_v42, %v835_v11  ;;  %v61_v55 = vmul.f32 %v56_v42, %v853_v20  ;;  %v59_v60 = vmul.f32 %v56_v42, %v837_v12 }
  0x64   :  { %v64_v61 = vmul.f32 %v56_v42, %v897_v43  ;;  %v62_v2 = vmul.f32 %v56_v42, %v882_v35  ;;  %v63_v9 = vmul.f32 %v56_v42, %v873_v31 }
  0x6c   :  { %v905_v47 = vpop.permute.xlu2 %157 }
  0x75   :  { %v107_v51 = vpop.permute.xlu2 %106 }
  0x76   :  { %v109_v52 = vmul.f32 %v107_v51, %v839_v13  ;;  %v111_v56 = vmul.f32 %v107_v51, %v835_v11  ;;  %v112_v59 = vmul.f32 %v107_v51, %v853_v20  ;;  %v115_v62 = vmul.f32 %v107_v51, %v897_v43 }
  0x77   :  { %v110_v63 = vmul.f32 %v107_v51, %v837_v12  ;;  %v114_v0 = vmul.f32 %v107_v51, %v873_v31  ;;  %v113_v5 = vmul.f32 %v107_v51, %v882_v35 }
  0x79   :  { %v841_v14 = vpop.permute.xlu0 %168 }
  0x7a   :  { %v173_v15 = vmul.f32 %v841_v14, %v835_v11  ;;  %v172_v16 = vmul.f32 %v841_v14, %v837_v12  ;;  %v171_v17 = vmul.f32 %v841_v14, %v839_v13  ;;  %v324_v18 = vpop.permute.xlu1 %323  ;;  %v174_v22 = vmul.f32 %v841_v14, %v853_v20 }
  0x7b   :  { %v326_v19 = vmul.f32 %v324_v18, %v839_v13  ;;  %v329_v24 = vmul.f32 %v324_v18, %v853_v20  ;;  %v328_v29 = vmul.f32 %v324_v18, %v835_v11  ;;  %v176_v33 = vmul.f32 %v841_v14, %v873_v31 }
  0x7c   :  { %189 = vrot.lane.b32.xlu0 %v173_v15, %s789_s25  ;;  %187 = vrot.lane.b32.xlu2 %v172_v16, %s789_s25  ;;  %v327_v34 = vmul.f32 %v324_v18, %v837_v12  ;;  %v330_v37 = vmul.f32 %v324_v18, %v882_v35  ;;  %v175_v38 = vmul.f32 %v841_v14, %v882_v35 }
  0x7d   :  { %185 = vrot.lane.b32.xlu1 %v171_v17, %s789_s25  ;;  %v332_v44 = vmul.f32 %v324_v18, %v897_v43  ;;  %v331_v49 = vmul.f32 %v324_v18, %v873_v31  ;;  %v177_v54 = vmul.f32 %v841_v14, %v897_v43  ;;  %v160_v17 = vmul.f32 %v905_v47, %v839_v13 }
  0x7e   :  { %v926_v58 = vpop.permute.xlu2 %45 }
  0x82   :  { %v221_v21 = vpop.permute.xlu0 %220 }
  0x83   :  { %v224_v23 = vmul.f32 %v221_v21, %v837_v12  ;;  %v223_v25 = vmul.f32 %v221_v21, %v839_v13  ;;  %v226_v26 = vmul.f32 %v221_v21, %v853_v20  ;;  %v376_v27 = vpop.permute.xlu1 %375  ;;  %v225_v30 = vmul.f32 %v221_v21, %v835_v11 }
  0x84   :  { %340 = vrot.lane.b32.xlu0 %v326_v19, %s789_s25  ;;  %v380_v28 = vmul.f32 %v376_v27, %v835_v11  ;;  %v379_v32 = vmul.f32 %v376_v27, %v837_v12  ;;  %v378_v36 = vmul.f32 %v376_v27, %v839_v13  ;;  %v383_v39 = vmul.f32 %v376_v27, %v873_v31 }
  0x85   :  { %191 = vrot.lane.b32.xlu1 %v174_v22, %s789_s25  ;;  %239 = vrot.lane.b32.xlu2 %v224_v23, %s790_s2  ;;  %v381_v40 = vmul.f32 %v376_v27, %v853_v20  ;;  %v228_v41 = vmul.f32 %v221_v21, %v873_v31  ;;  %v227_v45 = vmul.f32 %v221_v21, %v882_v35 }
  0x86   :  { %v382_v46 = vmul.f32 %v376_v27, %v882_v35  ;;  %v229_v50 = vmul.f32 %v221_v21, %v897_v43  ;;  %v384_v57 = vmul.f32 %v376_v27, %v897_v43  ;;  %v937_v1 = vpop.permute.xlu2 %469  ;;  %v161_v27 = vmul.f32 %v905_v47, %v837_v12 }
  0x8b   :  { %v943_v4 = vpop.permute.xlu0 %312 }
  0x8c   :  { %346 = vrot.lane.b32.xlu0 %v329_v24, %s789_s25 }
  0x8d   :  { %237 = vrot.lane.b32.xlu1 %v223_v25, %s790_s2  ;;  %243 = vrot.lane.b32.xlu2 %v226_v26, %s790_s2 }
  0x94   :  { %396 = vrot.lane.b32.xlu0 %v380_v28, %s790_s2  ;;  %v162_v28 = vmul.f32 %v905_v47, %v835_v11 }
  0x95   :  { %241 = vrot.lane.b32.xlu1 %v225_v30, %s790_s2  ;;  %344 = vrot.lane.b32.xlu2 %v328_v29, %s789_s25 }
  0x9c   :  { %195 = vrot.lane.b32.xlu0 %v176_v33, %s789_s25 }
  0x9d   :  { %342 = vrot.lane.b32.xlu1 %v327_v34, %s789_s25  ;;  %394 = vrot.lane.b32.xlu2 %v379_v32, %s790_s2 }
  0xa4   :  { %348 = vrot.lane.b32.xlu0 %v330_v37, %s789_s25 }
  0xa5   :  { %392 = vrot.lane.b32.xlu1 %v378_v36, %s790_s2  ;;  %193 = vrot.lane.b32.xlu2 %v175_v38, %s789_s25 }
  0xac   :  { %402 = vrot.lane.b32.xlu0 %v383_v39, %s790_s2 }
  0xad   :  { %398 = vrot.lane.b32.xlu1 %v381_v40, %s790_s2  ;;  %247 = vrot.lane.b32.xlu2 %v228_v41, %s790_s2  ;;  %v316_v41 = vmul.f32 %v943_v4, %v837_v12 }
  0xb4   :  { %352 = vrot.lane.b32.xlu0 %v332_v44, %s789_s25 }
  0xb5   :  { %245 = vrot.lane.b32.xlu1 %v227_v45, %s790_s2  ;;  %400 = vrot.lane.b32.xlu2 %v382_v46, %s790_s2 }
  0xbc   :  { %72 = vrot.lane.b32.xlu0 %v58_v48, %s789_s25 }
  0xbd   :  { %350 = vrot.lane.b32.xlu1 %v331_v49, %s789_s25  ;;  %249 = vrot.lane.b32.xlu2 %v229_v50, %s790_s2  ;;  %v315_v50 = vmul.f32 %v943_v4, %v839_v13 }
  0xc4   :  { %123 = vrot.lane.b32.xlu0 %v109_v52, %s790_s2 }
  0xc5   :  { %197 = vrot.lane.b32.xlu1 %v177_v54, %s789_s25  ;;  %76 = vrot.lane.b32.xlu2 %v60_v53, %s789_s25 }
  0xcc   :  { %78 = vrot.lane.b32.xlu0 %v61_v55, %s789_s25 }
  0xcd   :  { %404 = vrot.lane.b32.xlu1 %v384_v57, %s790_s2  ;;  %127 = vrot.lane.b32.xlu2 %v111_v56, %s790_s2 }
  0xd4   :  { %129 = vrot.lane.b32.xlu0 %v112_v59, %s790_s2  ;;  %v317_v59 = vmul.f32 %v943_v4, %v835_v11 }
  0xd5   :  { %74 = vrot.lane.b32.xlu1 %v59_v60, %s789_s25  ;;  %84 = vrot.lane.b32.xlu2 %v64_v61, %s789_s25 }
  0xd6   :  { %v188_v3 = vpop.permute.xlu2 %187 }
  0xdc   :  { %135 = vrot.lane.b32.xlu0 %v115_v62, %s790_s2 }
  0xdd   :  { %125 = vrot.lane.b32.xlu1 %v110_v63, %s790_s2  ;;  %133 = vrot.lane.b32.xlu2 %v114_v0, %s790_s2 }
  0xdf   :  { %v240_v6 = vpop.permute.xlu2 %239 }
  0xe5   :  { %80 = vrot.lane.b32.xlu1 %v62_v2, %s789_s25 }
  0xe7   :  { %v950_v15 = vpop.permute.xlu2 %243 }
  0xed   :  { %131 = vrot.lane.b32.xlu1 %v113_v5, %s790_s2 }
  0xee   :  { %v190_v7 = vpop.permute.xlu0 %189 }
  0xef   :  { %v186_v8 = vpop.permute.xlu1 %185  ;;  %v345_v24 = vpop.permute.xlu2 %344  ;;  %v200_v25 = vsel %vm86_vm0, %v188_v3, %v190_v7 }
  0xf0   :  { %v199_v16 = vsel %vm86_vm0, %v186_v8, %v188_v3  ;;  %v213_v30 = vadd.f32 %v200_v25, %v161_v27  ;;  %v319_v27 = vmul.f32 %v943_v4, %v882_v35 }
  0xf1   :  { %v212_v19 = vadd.f32 %v199_v16, %v160_v17 }
  0xf5   :  { %82 = vrot.lane.b32.xlu1 %v63_v9, %s789_s25 }
  0xf6   :  { %v341_v10 = vpop.permute.xlu0 %340 }
  0xf7   :  { %v192_v14 = vpop.permute.xlu1 %191  ;;  %v395_v39 = vpop.permute.xlu2 %394 }
  0xf8   :  { %v201_v26 = vsel %vm86_vm0, %v190_v7, %v192_v14  ;;  %v164_v7 = vmul.f32 %v905_v47, %v882_v35 }
  0xf9   :  { %v214_v32 = vadd.f32 %v201_v26, %v162_v28 }
  0xfe   :  { %v955_v18 = vpop.permute.xlu0 %346 }
  0xff   :  { %v238_v21 = vpop.permute.xlu1 %237  ;;  %v194_v51 = vpop.permute.xlu2 %193  ;;  %v356_v57 = vsel %vm86_vm0, %v345_v24, %v955_v18 }
 0x100   :  { %v251_v22 = vsel %vm137_vm1, %v238_v21, %v240_v6  ;;  %v369_v61 = vadd.f32 %v356_v57, %v317_v59  ;;  %v202_v3 = vsel %vm86_vm0, %v192_v14, %v194_v51 }
 0x101   :  { %v264_v23 = vadd.f32 %v251_v22, %v212_v19 }
 0x103   :  { %278 = vrot.lane.b32.xlu0 %v264_v23, %s791_s26 }
 0x106   :  { %v397_v29 = vpop.permute.xlu0 %396 }
 0x107   :  { %v242_v33 = vpop.permute.xlu1 %241  ;;  %v407_v46 = vsel %vm137_vm1, %v395_v39, %v397_v29  ;;  %v248_v63 = vpop.permute.xlu2 %247 }
 0x108   :  { %v252_v34 = vsel %vm137_vm1, %v240_v6, %v242_v33  ;;  %v253_v36 = vsel %vm137_vm1, %v242_v33, %v950_v15  ;;  %v163_v6 = vmul.f32 %v905_v47, %v853_v20 }
 0x109   :  { %v265_v37 = vadd.f32 %v252_v34, %v213_v30  ;;  %v266_v38 = vadd.f32 %v253_v36, %v214_v32  ;;  %v166_v36 = vmul.f32 %v905_v47, %v897_v43 }
 0x10a   :  { %v215_v9 = vadd.f32 %v202_v3, %v163_v6  ;;  %v52_v3 = vmul.f32 %v926_v58, %v882_v35 }
 0x10b   :  { %282 = vrot.lane.b32.xlu2 %v266_v38, %s791_s26  ;;  %280 = vrot.lane.b32.xlu1 %v265_v37, %s791_s26  ;;  %v165_v38 = vmul.f32 %v905_v47, %v873_v31  ;;  %v50_v47 = vmul.f32 %v926_v58, %v835_v11  ;;  %v486_v11 = vld [vmem:[%s1143_s4] sm:$0xff] }
 0x10e   :  { %v196_v40 = vpop.permute.xlu0 %195 }
 0x10f   :  { %v343_v42 = vpop.permute.xlu1 %342  ;;  %v203_v5 = vsel %vm86_vm0, %v194_v51, %v196_v40  ;;  %v401_v14 = vpop.permute.xlu2 %400 }
 0x110   :  { %v355_v44 = vsel %vm86_vm0, %v343_v42, %v345_v24  ;;  %v354_v49 = vsel %vm86_vm0, %v341_v10, %v343_v42  ;;  %v216_v10 = vadd.f32 %v203_v5, %v164_v7  ;;  %v318_v24 = vmul.f32 %v943_v4, %v853_v20 }
 0x111   :  { %v368_v45 = vadd.f32 %v355_v44, %v316_v41  ;;  %v367_v53 = vadd.f32 %v354_v49, %v315_v50  ;;  %v320_v50 = vmul.f32 %v943_v4, %v873_v31  ;;  %v53_v5 = vmul.f32 %v926_v58, %v873_v31 }
 0x113   :  { %v420_v48 = vadd.f32 %v407_v46, %v368_v45 }
 0x115   :  { %435 = vrot.lane.b32.xlu1 %v420_v48, %s792_s27 }
 0x116   :  { %v349_v52 = vpop.permute.xlu0 %348 }
 0x117   :  { %v393_v54 = vpop.permute.xlu1 %392  ;;  %v357_v23 = vsel %vm86_vm0, %v955_v18, %v349_v52  ;;  %v250_v34 = vpop.permute.xlu2 %249 }
 0x118   :  { %v406_v55 = vsel %vm137_vm1, %v393_v54, %v395_v39  ;;  %v256_v45 = vsel %vm137_vm1, %v248_v63, %v250_v34 }
 0x119   :  { %v419_v56 = vadd.f32 %v406_v55, %v367_v53 }
 0x11b   :  { %433 = vrot.lane.b32.xlu0 %v419_v56, %s792_s27 }
 0x11e   :  { %v403_v60 = vpop.permute.xlu0 %402 }
 0x11f   :  { %v399_v62 = vpop.permute.xlu1 %398  ;;  %v410_v33 = vsel %vm137_vm1, %v401_v14, %v403_v60  ;;  %v77_v51 = vpop.permute.xlu2 %76 }
 0x120   :  { %v408_v0 = vsel %vm137_vm1, %v397_v29, %v399_v62  ;;  %v409_v25 = vsel %vm137_vm1, %v399_v62, %v401_v14 }
 0x121   :  { %v421_v2 = vadd.f32 %v408_v0, %v369_v61 }
 0x123   :  { %437 = vrot.lane.b32.xlu2 %v421_v2, %s792_s27 }
 0x126   :  { %v353_v8 = vpop.permute.xlu0 %352 }
 0x127   :  { %v246_v16 = vpop.permute.xlu1 %245 }
 0x128   :  { %v254_v17 = vsel %vm137_vm1, %v950_v15, %v246_v16  ;;  %v255_v19 = vsel %vm137_vm1, %v246_v16, %v248_v63  ;;  %v370_v15 = vadd.f32 %v357_v23, %v318_v24  ;;  %v128_v63 = vpop.permute.xlu2 %127  ;;  %v49_v23 = vmul.f32 %v926_v58, %v837_v12 }
 0x129   :  { %v267_v21 = vadd.f32 %v254_v17, %v215_v9  ;;  %v268_v22 = vadd.f32 %v255_v19, %v216_v10 }
 0x12a   :  { %v422_v30 = vadd.f32 %v409_v25, %v370_v15 }
 0x12b   :  { %284 = vrot.lane.b32.xlu2 %v267_v21, %s791_s26  ;;  %286 = vrot.lane.b32.xlu0 %v268_v22, %s791_s26 }
 0x12e   :  { %v1002_v26 = vpop.permute.xlu0 %72 }
 0x12f   :  { %v351_v28 = vpop.permute.xlu1 %350 }
 0x130   :  { %v358_v29 = vsel %vm86_vm0, %v349_v52, %v351_v28  ;;  %v359_v49 = vsel %vm86_vm0, %v351_v28, %v353_v8  ;;  %v321_v52 = vmul.f32 %v943_v4, %v897_v43 }
 0x131   :  { %v371_v32 = vadd.f32 %v358_v29, %v319_v27  ;;  %v372_v53 = vadd.f32 %v359_v49, %v320_v50 }
 0x132   :  { %v373_v59 = vadd.f32 %v353_v8, %v321_v52 }
 0x133   :  { %439 = vrot.lane.b32.xlu0 %v422_v30, %s792_s27  ;;  %v423_v18 = vadd.f32 %v410_v33, %v371_v32  ;;  %v48_v30 = vmul.f32 %v926_v58, %v839_v13  ;;  %v1075_v13 = vld [vmem:[%s1142_s3] sm:$0xff] }
 0x135   :  { %441 = vrot.lane.b32.xlu1 %v423_v18, %s792_s27 }
 0x136   :  { %v1012_v37 = vpop.permute.xlu0 %123 }
 0x137   :  { %v198_v39 = vpop.permute.xlu1 %197 }
 0x138   :  { %v204_v41 = vsel %vm86_vm0, %v196_v40, %v198_v39  ;;  %v218_v42 = vadd.f32 %v198_v39, %v166_v36 }
 0x139   :  { %v217_v44 = vadd.f32 %v204_v41, %v165_v38 }
 0x13a   :  { %v270_v46 = vadd.f32 %v250_v34, %v218_v42 }
 0x13b   :  { %v269_v48 = vadd.f32 %v256_v45, %v217_v44 }
 0x13c   :  { %290 = vrot.lane.b32.xlu2 %v270_v46, %s791_s26 }
 0x13d   :  { %288 = vrot.lane.b32.xlu1 %v269_v48, %s791_s26  ;;  %v1081_v48 = vld [vmem:[%s1142_s3 + $0x8] sm:$0xff] }
 0x13e   :  { %v1025_v40 = vpop.permute.xlu0 %78 }
 0x13f   :  { %v405_v54 = vpop.permute.xlu1 %404  ;;  %v89_v55 = vsel %vm86_vm0, %v77_v51, %v1025_v40 }
 0x140   :  { %v411_v56 = vsel %vm137_vm1, %v403_v60, %v405_v54  ;;  %v1032_v57 = vadd.f32 %v89_v55, %v50_v47  ;;  %v425_v62 = vadd.f32 %v405_v54, %v373_v59  ;;  %v85_v60 = vpop.permute.xlu2 %84  ;;  %v487_v54 = vld [vmem:[%s1143_s4 + $0x8] sm:$0xff]  ;;  %v51_v55 = vmul.f32 %v926_v58, %v853_v20  ;;  %s793_s4 = smov [#allocation5]  }
 0x141   :  { %v424_v61 = vadd.f32 %v411_v56, %v372_v53  ;;  %s671_s10 = sshll.u32 %s793_s4, 4  ;;  %s672_s10 = int_to_ptr.vmem [resolvable:$true] %s671_s10 }
 0x143   :  { %443 = vrot.lane.b32.xlu0 %v424_v61, %s792_s27 }
 0x144   :  { %490 = vperm.xlu2 %725, %v486_v11  }
 0x145   :  { %445 = vrot.lane.b32.xlu1 %v425_v62, %s792_s27 }
 0x146   :  { %v130_v35 = vpop.permute.xlu0 %129 }
 0x147   :  { %v75_v43 = vpop.permute.xlu1 %74  ;;  %v140_v52 = vsel %vm137_vm1, %v128_v63, %v130_v35 }
 0x148   :  { %v1047_v9 = vpop.permute.xlu2 %133  ;;  %v88_v14 = vsel %vm86_vm0, %v75_v43, %v77_v51  ;;  %v87_v29 = vsel %vm86_vm0, %v1002_v26, %v75_v43  ;;  %v152_v61 = vadd.f32 %v140_v52, %v1032_v57 }
 0x149   :  { %v100_v25 = vadd.f32 %v88_v14, %v49_v23  ;;  %v99_v36 = vadd.f32 %v87_v29, %v48_v30 }
 0x14b   :  { %495 = vperm.xlu0 %726, %v487_v54  }
 0x14e   :  { %v1056_v21 = vpop.permute.xlu0 %135 }
 0x14f   :  { %v126_v4 = vpop.permute.xlu1 %125 }
 0x150   :  { %v139_v24 = vsel %vm137_vm1, %v126_v4, %v128_v63  ;;  %v138_v12 = vsel %vm137_vm1, %v1012_v37, %v126_v4 }
 0x151   :  { %v151_v27 = vadd.f32 %v139_v24, %v100_v25  ;;  %v150_v41 = vadd.f32 %v138_v12, %v99_v36 }
 0x157   :  { %v81_v0 = vpop.permute.xlu1 %80 }
 0x158   :  { %v90_v53 = vsel %vm86_vm0, %v1025_v40, %v81_v0 }
 0x159   :  { %v102_v11 = vadd.f32 %v90_v53, %v51_v55 }
 0x15f   :  { %v1039_v2 = vpop.permute.xlu1 %131 }
 0x160   :  { %v142_v17 = vsel %vm137_vm1, %v1039_v2, %v1047_v9  ;;  %v141_v56 = vsel %vm137_vm1, %v130_v35, %v1039_v2 }
 0x161   :  { %v153_v43 = vadd.f32 %v141_v56, %v102_v11 }
 0x165   :  { %v283_v31 = vpop.permute.xlu2 %282 }
 0x167   :  { %v83_v6 = vpop.permute.xlu1 %82 }
 0x168   :  { %v91_v7 = vsel %vm86_vm0, %v81_v0, %v83_v6  ;;  %v92_v8 = vsel %vm86_vm0, %v83_v6, %v85_v60 }
 0x169   :  { %v103_v10 = vadd.f32 %v91_v7, %v52_v3  ;;  %v1049_v16 = vadd.f32 %v92_v8, %v53_v5 }
 0x16b   :  { %v1054_v19 = vadd.f32 %v142_v17, %v103_v10  ;;  %v143_v17 = vsel %vm137_vm1, %v1047_v9, %v1056_v21 }
 0x175   :  { %v279_v28 = vpop.permute.xlu0 %278 }
 0x17d   :  { %v281_v22 = vpop.permute.xlu1 %280  ;;  %v438_v32 = vpop.permute.xlu2 %437 }
 0x17e   :  { %v294_v15 = vsel %vm292_vm2, %v281_v22, %v283_v31  ;;  %v293_v39 = vsel %vm292_vm2, %v279_v28, %v281_v22 }
 0x17f   :  { %v306_v33 = vadd.f32 %v294_v15, %v151_v27  ;;  %v305_v44 = vadd.f32 %v293_v39, %v150_v41 }
 0x185   :  { %v285_v47 = vpop.permute.xlu2 %284 }
 0x186   :  { %v295_v59 = vsel %vm292_vm2, %v283_v31, %v285_v47  ;;  %v155_v31 = vadd.f32 %v143_v17, %v1049_v16 }
 0x187   :  { %v436_v18 = vpop.permute.xlu1 %435  ;;  %v307_v40 = vadd.f32 %v295_v59, %v152_v61 }
 0x188   :  { %v449_v34 = vsel %vm447_vm3, %v436_v18, %v438_v32 }
 0x189   :  { %v461_v38 = vadd.f32 %v449_v34, %v306_v33 }
 0x18b   :  { %v473_v42 = vadd.f32 %v937_v1, %v461_v38 }
 0x18d   :  { %v434_v26 = vpop.permute.xlu0 %433  ;;  %v479_v45 = vmax.f32 %v473_v42, 0.0 }
 0x18e   :  { %v448_v37 = vsel %vm447_vm3, %v434_v26, %v436_v18 }
 0x18f   :  { %v460_v46 = vadd.f32 %v448_v37, %v305_v44  ;;  %543 = vmatpush.msra.mxu1 %v479_v45  ;;  %699 = vmatpush.msra.mxu3 %v479_v45 }
 0x190   :  { %688 = vmatmul.msk.f32.vlgmr.msra.gmra.mxu1 %vm498_vm4, %v1075_v13  ;;  %689 = vmatmul.msk.f32.vlgmr.msra.gmra.mxu3 %vm498_vm4, %v1081_v48 }
 0x191   :  { %v472_v49 = vadd.f32 %v937_v1, %v460_v46 }
 0x193   :  { %v478_v50 = vmax.f32 %v472_v49, 0.0 }
 0x195   :  { %520 = vmatpush.msra.mxu0 %v478_v50  ;;  %698 = vmatpush.msra.mxu2 %v478_v50 }
 0x196   :  { %686 = vmatmul.msk.f32.vlgmr.msra.gmra.mxu0 %vm498_vm4, %v1075_v13  ;;  %687 = vmatmul.msk.f32.vlgmr.msra.gmra.mxu2 %vm498_vm4, %v1081_v48  ;;  %v291_v10 = vpop.permute.xlu2 %290 }
 0x19d   :  { %v287_v51 = vpop.permute.xlu0 %286 }
 0x19e   :  { %v296_v62 = vsel %vm292_vm2, %v285_v47, %v287_v51  ;;  %v491_v29 = vpop.permute.xlu2 %490 }
 0x19f   :  { %v308_v0 = vadd.f32 %v296_v62, %v153_v43 }
 0x1a5   :  { %v440_v4 = vpop.permute.xlu0 %439 }
 0x1a6   :  { %v450_v63 = vsel %vm447_vm3, %v438_v32, %v440_v4 }
 0x1a7   :  { %v462_v60 = vadd.f32 %v450_v63, %v307_v40  ;;  %v442_v3 = vpop.permute.xlu1 %441 }
 0x1a8   :  { %v451_v20 = vsel %vm447_vm3, %v440_v4, %v442_v3 }
 0x1a9   :  { %v463_v58 = vadd.f32 %v451_v20, %v308_v0  ;;  %v474_v2 = vadd.f32 %v937_v1, %v462_v60 }
 0x1ab   :  { %v480_v5 = vmax.f32 %v474_v2, 0.0  ;;  %v475_v6 = vadd.f32 %v937_v1, %v463_v58 }
 0x1ad   :  { %566 = vmatpush.msrb.mxu2 %v480_v5  ;;  %v481_v57 = vmax.f32 %v475_v6, 0.0 }
 0x1ae   :  { %690 = vmatmul.msk.f32.vlgmr.msrb.gmra.mxu2 %vm498_vm4, %v1075_v13 }
 0x1af   :  { %v289_v7 = vpop.permute.xlu1 %288  ;;  %589 = vmatpush.msrb.mxu3 %v481_v57 }
 0x1b0   :  { %692 = vmatmul.msk.f32.vlgmr.msrb.gmra.mxu3 %vm498_vm4, %v1075_v13  ;;  %v297_v8 = vsel %vm292_vm2, %v287_v51, %v289_v7  ;;  %v298_v35 = vsel %vm292_vm2, %v289_v7, %v291_v10 }
 0x1b1   :  { %v309_v22 = vadd.f32 %v297_v8, %v1054_v19  ;;  %v310_v24 = vadd.f32 %v298_v35, %v155_v31 }
 0x1b5   :  { %v444_v14 = vpop.permute.xlu0 %443 }
 0x1b6   :  { %v452_v23 = vsel %vm447_vm3, %v442_v3, %v444_v14  ;;  %691 = vmatmul.msk.f32.gmra.mxu2 %vm498_vm4, %v1081_v48 }
 0x1b7   :  { %v464_v25 = vadd.f32 %v452_v23, %v309_v22  ;;  %v446_v15 = vpop.permute.xlu1 %445 }
 0x1b8   :  { %v453_v27 = vsel %vm447_vm3, %v444_v14, %v446_v15  ;;  %693 = vmatmul.msk.f32.gmra.mxu3 %vm498_vm4, %v1081_v48 }
 0x1b9   :  { %v465_v9 = vadd.f32 %v453_v27, %v310_v24  ;;  %v476_v21 = vadd.f32 %v937_v1, %v464_v25 }
 0x1bb   :  { %v482_v16 = vmax.f32 %v476_v21, 0.0  ;;  %v477_v19 = vadd.f32 %v937_v1, %v465_v9 }
 0x1bd   :  { %612 = vmatpush.msrb.mxu0 %v482_v16  ;;  %v483_v28 = vmax.f32 %v477_v19, 0.0  ;;  %v496_v36 = vpop.permute.xlu0 %495 }
 0x1be   :  { %694 = vmatmul.msk.f32.vlgmr.msrb.gmra.mxu0 %vm498_vm4, %v1075_v13 }
 0x1bf   :  { %635 = vmatpush.msrb.mxu1 %v483_v28 }
 0x1c0   :  { %696 = vmatmul.msk.f32.vlgmr.msrb.gmra.mxu1 %vm498_vm4, %v1075_v13 }
 0x1c6   :  { %695 = vmatmul.msk.f32.gmra.mxu0 %vm498_vm4, %v1081_v48 }
 0x1c8   :  { %697 = vmatmul.msk.f32.gmra.mxu1 %vm498_vm4, %v1081_v48 }
 0x20d   :  { %v545_v30 = vpop.f32.mrf.mxu1 }
 0x20e   :  { %v546_v32 = vadd.f32 %v545_v30, %v491_v29 }
 0x210   :  { %v644_v33 = vmax.f32 %v546_v32, 0.0 }
 0x212   :  { %656 = vst [vmem:[#allocation5 + $0x8] sm:$0xff] %v644_v33 }
 0x213   :  { %v522_v1 = vpop.f32.mrf.mxu0  ;;  %v548_v34 = vpop.f32.mrf.mxu3 }
 0x214   :  { %v523_v18 = vadd.f32 %v522_v1, %v491_v29  ;;  %v549_v38 = vadd.f32 %v548_v34, %v496_v36 }
 0x216   :  { %v643_v12 = vmax.f32 %v523_v18, 0.0  ;;  %v650_v42 = vmax.f32 %v549_v38, 0.0 }
 0x218   :  { %655 = vst [vmem:[#allocation5] sm:$0xff] %v643_v12 }
 0x219   :  { %v525_v39 = vpop.f32.mrf.mxu2  ;;  %662 = vst [vmem:[#allocation5 + $0x38] sm:$0xff] %v650_v42 }
 0x21a   :  { %v526_v41 = vadd.f32 %v525_v39, %v496_v36 }
 0x21c   :  { %v649_v44 = vmax.f32 %v526_v41, 0.0 }
 0x21e   :  { %661 = vst [vmem:[#allocation5 + $0x30] sm:$0xff] %v649_v44 }
 0x231   :  { %v568_v26 = vpop.f32.mrf.mxu2 }
 0x232   :  { %v569_v45 = vadd.f32 %v568_v26, %v491_v29 }
 0x233   :  { %v591_v13 = vpop.f32.mrf.mxu3 }
 0x234   :  { %v645_v37 = vmax.f32 %v569_v45, 0.0  ;;  %v592_v46 = vadd.f32 %v591_v13, %v491_v29 }
 0x236   :  { %657 = vst [vmem:[#allocation5 + $0x10] sm:$0xff] %v645_v37  ;;  %v646_v48 = vmax.f32 %v592_v46, 0.0 }
 0x238   :  { %658 = vst [vmem:[#allocation5 + $0x18] sm:$0xff] %v646_v48 }
 0x239   :  { %v571_v49 = vpop.f32.mrf.mxu2 }
 0x23a   :  { %v572_v50 = vadd.f32 %v571_v49, %v496_v36 }
 0x23b   :  { %v614_v51 = vpop.f32.mrf.mxu0  ;;  %v594_v47 = vpop.f32.mrf.mxu3 }
 0x23c   :  { %v615_v52 = vadd.f32 %v614_v51, %v491_v29  ;;  %v651_v53 = vmax.f32 %v572_v50, 0.0  ;;  %v595_v54 = vadd.f32 %v594_v47, %v496_v36 }
 0x23d   :  { %v637_v55 = vpop.f32.mrf.mxu1 }
 0x23e   :  { %v647_v56 = vmax.f32 %v615_v52, 0.0  ;;  %v638_v59 = vadd.f32 %v637_v55, %v491_v29  ;;  %663 = vst [vmem:[#allocation5 + $0x40] sm:$0xff] %v651_v53  ;;  %v652_v61 = vmax.f32 %v595_v54, 0.0 }
 0x240   :  { %659 = vst [vmem:[#allocation5 + $0x20] sm:$0xff] %v647_v56  ;;  %v648_v11 = vmax.f32 %v638_v59, 0.0 }
 0x241   :  { %664 = vst [vmem:[#allocation5 + $0x48] sm:$0xff] %v652_v61 }
 0x242   :  { %660 = vst [vmem:[#allocation5 + $0x28] sm:$0xff] %v648_v11 }
 0x243   :  { %v617_v62 = vpop.f32.mrf.mxu0 }
 0x244   :  { %v618_v43 = vadd.f32 %v617_v62, %v496_v36 }
 0x245   :  { %v640_v40 = vpop.f32.mrf.mxu1 }
 0x246   :  { %v653_v4 = vmax.f32 %v618_v43, 0.0  ;;  %v641_v63 = vadd.f32 %v640_v40, %v496_v36 }
 0x248   :  { %665 = vst [vmem:[#allocation5 + $0x50] sm:$0xff] %v653_v4  ;;  %v654_v0 = vmax.f32 %v641_v63, 0.0 }
 0x24a   :  { %666 = vst [vmem:[#allocation5 + $0x58] sm:$0xff] %v654_v0 }
 0x24b   :  { %679 = dma.vmem_to_hbm [thread:$0]  %s672_s10, 1536, %s674_s13, [#allocation4], %s794_s14, %s794_s14, %s795_s15  }
 0x24c   :  { %777 = dma.done.wait [#allocation4], 1536  }
 0x24d   :  { %778 = vsyncadd [#allocation4], 4294965760 }
 0x24e   :  { %684 = vsyncpa [#allocation3], 1 }
 0x24f   :  { %685 = vsyncpa [#allocation4], 1 }

</bundles_post_ra>
